<compile_context>
chip_gen: v7x
topology: tpu7x:2x2x1
jax: 0.10.0
libtpu: 0.0.40
codegen_flags: <defaults>
</compile_context>

<pallas_src>
import functools

import jax
import jax.numpy as jnp
from jax import lax
from jax.experimental import pallas as pl
from jax.experimental.pallas import tpu as pltpu


def _round_down8(x):
    return max(8, (x // 8) * 8)


def _pad128(n):
    return -(-n // 128) * 128


def _default_num_splits():
    # Best effort: 2 TensorCores per chip on megacore generations.
    try:
        kind = jax.devices()[0].device_kind.lower()
    except Exception:
        return 1
    if ("v4" in kind) or ("v5p" in kind) or ("v7" in kind):
        return 2
    return 1


def _log_return_partial_kernel(w_ref, r_ref, out_ref, acc_ref, *,
                               true_batch, num_assets, block_rows,
                               tiles_per_split):
    i = pl.program_id(1)  # batch-tile (reduction) axis, runs last

    @pl.when(i == 0)
    def _init():
        acc_ref[...] = jnp.zeros_like(acc_ref)

    w = w_ref[...].astype(jnp.float32)          # (block_rows, num_assets)
    r = r_ref[...].astype(jnp.float32)          # (block_rows, r_cols)
    if r.shape[1] > num_assets:                 # drop extra return columns here
        r = r[:, :num_assets]                   # (no wrapper-side slice copy)

    prod = w * r

    # Mask rows past the true batch: covers the padded last tile and any
    # fully out-of-range tiles introduced by the core split.
    tile = pl.program_id(0) * tiles_per_split + i
    row = lax.broadcasted_iota(jnp.int32, prod.shape, 0)
    valid = (tile * block_rows + row) < true_batch
    acc_ref[...] += jnp.where(valid, prod, 0.0)

    @pl.when(i == pl.num_programs(1) - 1)
    def _finalize():
        total = jnp.sum(acc_ref[...])
        # Lane-dense (8,128) output slab; every element holds the partial sum.
        out_ref[...] = jnp.full(out_ref.shape, total, dtype=out_ref.dtype)


def log_return_loss(pred_weights, actual_returns, *, block_batch=None,
                    num_splits=None, min_pallas_elems=1024,
                    vmem_budget_bytes=8 * 1024 * 1024):
    """Negative mean portfolio log return.

    pred_weights:   [batch, num_assets]
    actual_returns: [batch, num_assets_r] with num_assets_r >= num_assets
    returns: scalar f32
    """
    b, a = pred_weights.shape
    br, a_r = actual_returns.shape
    assert br == b and a_r >= a

    # Tiny problems: launch/pipeline overhead dominates -> let XLA fuse it.
    if b * a < min_pallas_elems:
        r = actual_returns[:, :a] if a_r > a else actual_returns
        port = jnp.sum(pred_weights.astype(jnp.float32) *
                       r.astype(jnp.float32), axis=1)
        return -jnp.mean(port)

    # Column handling without a wrapper-side slice copy of actual_returns:
    #  * assets multiple of 128 -> the block DMA simply never reads the tail
    #  * otherwise              -> DMA full rows, drop the tail in-kernel
    if a_r > a and a % 128 == 0:
        r_cols = a
    else:
        r_cols = a_r

    # Batch tile size: biggest block whose double-buffered inputs + f32
    # accumulator fit a conservative VMEM budget (accounts for lane padding).
    if block_batch is None:
        per_row = (2 * _pad128(a) * pred_weights.dtype.itemsize
                   + 2 * _pad128(r_cols) * actual_returns.dtype.itemsize
                   + 4 * _pad128(a))
        block_batch = min(512, max(8, vmem_budget_bytes // per_row))
    block_batch = int(block_batch)
    if block_batch >= b or b <= 8:
        tb = b                                   # full batch, single tile
    else:
        tb = _round_down8(min(block_batch, b))   # (8,128) sublane rule

    tiles_total = pl.cdiv(b, tb)

    if num_splits is None:
        num_splits = _default_num_splits()
    num_splits = max(1, min(int(num_splits), tiles_total))
    tiles_per_split = pl.cdiv(tiles_total, num_splits)
    last_tile = tiles_total - 1

    def in_index_map(s, i):
        # Clamp so the DMA never targets an out-of-range block; the in-kernel
        # row mask zeroes any duplicated / padded rows.
        return (jnp.minimum(s * tiles_per_split + i, last_tile), 0)

    kernel = functools.partial(
        _log_return_partial_kernel,
        true_batch=b, num_assets=a, block_rows=tb,
        tiles_per_split=tiles_per_split)

    cost = pl.CostEstimate(
        flops=2 * b * a,
        transcendentals=0,
        bytes_accessed=(b * a * pred_weights.dtype.itemsize
                        + b * r_cols * actual_returns.dtype.itemsize
                        + num_splits * 8 * 128 * 4))

    partials = pl.pallas_call(
        kernel,
        out_shape=jax.ShapeDtypeStruct((num_splits, 8, 128), jnp.float32),
        grid=(num_splits, tiles_per_split),
        in_specs=[
            pl.BlockSpec((tb, a), in_index_map),
            pl.BlockSpec((tb, r_cols), in_index_map),
        ],
        out_specs=pl.BlockSpec((1, 8, 128), lambda s, i: (s, 0, 0)),
        scratch_shapes=[pltpu.VMEM((tb, a), jnp.float32)],
        compiler_params=pltpu.CompilerParams(
            dimension_semantics=("parallel", "arbitrary")),
        cost_estimate=cost,
    )(pred_weights, actual_returns)

    # Combine per-core partial sums; divide by the TRUE batch and negate.
    total = jnp.sum(partials[:, 0, 0])
    return -(total / jnp.float32(b))


if __name__ == "__main__":
    key = jax.random.PRNGKey(0)
    k1, k2, k3, k4 = jax.random.split(key, 4)

    # Main check: multi-tile grid, partial last tile (120 % 32 != 0), 2-way
    # core split, and extra return columns dropped inside the kernel.
    batch, num_assets = 120, 16
    logits = jax.random.normal(k1, (batch, num_assets), dtype=jnp.float32)
    pred_weights = jax.nn.softmax(logits, axis=1)
    actual_returns = 0.01 * jax.random.normal(
        k2, (batch, num_assets + 2), dtype=jnp.float32)

    loss = log_return_loss(pred_weights, actual_returns,
                           block_batch=32, num_splits=2)
    jax.block_until_ready(loss)
    ref = -jnp.mean(jnp.sum(pred_weights * actual_returns[:, :num_assets], axis=1))
    assert jnp.allclose(loss, ref, atol=1e-6, rtol=1e-5), (loss, ref)

    # Default path: auto tile size / auto core-split, equal column counts.
    b2, a2 = 256, 32
    w2 = jax.nn.softmax(jax.random.normal(k3, (b2, a2), dtype=jnp.float32), axis=1)
    r2 = 0.01 * jax.random.normal(k4, (b2, a2), dtype=jnp.float32)
    loss2 = log_return_loss(w2, r2)
    jax.block_until_ready(loss2)
    ref2 = -jnp.mean(jnp.sum(w2 * r2, axis=1))
    assert jnp.allclose(loss2, ref2, atol=1e-6, rtol=1e-5), (loss2, ref2)

    # Tiny-input path: size-gated jnp fallback (kernel is pure overhead here).
    w3 = jax.nn.softmax(jax.random.normal(k1, (4, 8), dtype=jnp.float32), axis=1)
    r3 = 0.01 * jax.random.normal(k2, (4, 10), dtype=jnp.float32)
    loss3 = log_return_loss(w3, r3)
    jax.block_until_ready(loss3)
    ref3 = -jnp.mean(jnp.sum(w3 * r3[:, :8], axis=1))
    assert jnp.allclose(loss3, ref3, atol=1e-6, rtol=1e-5), (loss3, ref3)

    print("KERNEL_OK")
</pallas_src>

<mosaic_0001>
module attributes {stable_mosaic.version = 11 : i64} {
  func.func @_log_return_partial_kernel(%arg0: i32, %arg1: i32, %arg2: memref<32x16xf32, #tpu.memory_space<vmem>>, %arg3: memref<32x18xf32, #tpu.memory_space<vmem>>, %arg4: memref<1x8x128xf32, #tpu.memory_space<vmem>>, %arg5: memref<32x16xf32, #tpu.memory_space<vmem>>) attributes {dimension_semantics = [#tpu.dimension_semantics<parallel>, #tpu.dimension_semantics<arbitrary>], iteration_bounds = array<i64: 2, 2>, scalar_prefetch = 0 : i64, scratch_operands = 1 : i64, tpu.core_type = #tpu.core_type<tc>, window_params = [{transform_indices = @transform_0, window_bounds = array<i64: 32, 16>}, {transform_indices = @transform_1, window_bounds = array<i64: 32, 18>}, {transform_indices = @transform_2, window_bounds = array<i64: 1, 8, 128>}]} {
    %c0_i32 = arith.constant 0 : i32
    %0 = arith.cmpi eq, %arg1, %c0_i32 : i32
    %1 = arith.extui %0 : i1 to i32
    %c0_i32_0 = arith.constant 0 : i32
    %2 = arith.cmpi ne, %1, %c0_i32_0 : i32
    scf.if %2 {
      %cst_9 = arith.constant 0.000000e+00 : f32
      %23 = vector.broadcast %cst_9 : f32 to vector<32x16xf32>
      %c0_10 = arith.constant 0 : index
      %c0_11 = arith.constant 0 : index
      %24 = vector.load %arg5[%c0_10, %c0_11] : memref<32x16xf32, #tpu.memory_space<vmem>>, vector<32x16xf32>
      tpu.vector_store %arg5[%c0_10, %c0_11], %23 {strides = array<i32>} : memref<32x16xf32, #tpu.memory_space<vmem>>, vector<32x16xf32>,
    } else {
    }
    %c0 = arith.constant 0 : index
    %c0_1 = arith.constant 0 : index
    %3 = vector.load %arg2[%c0, %c0_1] : memref<32x16xf32, #tpu.memory_space<vmem>>, vector<32x16xf32>
    %c0_2 = arith.constant 0 : index
    %c0_3 = arith.constant 0 : index
    %4 = vector.load %arg3[%c0_2, %c0_3] : memref<32x18xf32, #tpu.memory_space<vmem>>, vector<32x18xf32>
    %5 = vector.extract_strided_slice %4 {offsets = [0, 0], sizes = [32, 16], strides = [1, 1]} : vector<32x18xf32> to vector<32x16xf32>
    %6 = arith.mulf %3, %5 : vector<32x16xf32>
    %c2_i32 = arith.constant 2 : i32
    %7 = arith.muli %arg0, %c2_i32 : i32
    %8 = arith.addi %7, %arg1 : i32
    %9 = tpu.iota {dimensions = array<i32: 0>} : vector<32x16xi32>
    %c32_i32 = arith.constant 32 : i32
    %10 = arith.muli %8, %c32_i32 : i32
    %11 = vector.broadcast %10 : i32 to vector<32x16xi32>
    %12 = arith.addi %11, %9 : vector<32x16xi32>
    %c120_i32 = arith.constant 120 : i32
    %13 = vector.broadcast %c120_i32 : i32 to vector<32x16xi32>
    %14 = arith.cmpi slt, %12, %13 : vector<32x16xi32>
    %c0_4 = arith.constant 0 : index
    %c0_5 = arith.constant 0 : index
    %15 = vector.load %arg5[%c0_4, %c0_5] : memref<32x16xf32, #tpu.memory_space<vmem>>, vector<32x16xf32>
    %cst = arith.constant 0.000000e+00 : f32
    %16 = vector.broadcast %cst : f32 to vector<32x16xf32>
    %17 = arith.select %14, %6, %16 : vector<32x16xi1>, vector<32x16xf32>
    %18 = arith.addf %15, %17 : vector<32x16xf32>
    %c0_6 = arith.constant 0 : index
    %c0_7 = arith.constant 0 : index
    %19 = vector.load %arg5[%c0_6, %c0_7] : memref<32x16xf32, #tpu.memory_space<vmem>>, vector<32x16xf32>
    tpu.vector_store %arg5[%c0_6, %c0_7], %18 {strides = array<i32>} : memref<32x16xf32, #tpu.memory_space<vmem>>, vector<32x16xf32>,
    %c1_i32 = arith.constant 1 : i32
    %20 = arith.cmpi eq, %arg1, %c1_i32 : i32
    %21 = arith.extui %20 : i1 to i32
    %c0_i32_8 = arith.constant 0 : i32
    %22 = arith.cmpi ne, %21, %c0_i32_8 : i32
    scf.if %22 {
      %c0_9 = arith.constant 0 : index
      %c0_10 = arith.constant 0 : index
      %23 = vector.load %arg5[%c0_9, %c0_10] : memref<32x16xf32, #tpu.memory_space<vmem>>, vector<32x16xf32>
      %24 = vector.shape_cast %23 : vector<32x16xf32> to vector<1x32x16xf32>
      %cst_11 = arith.constant dense<0.000000e+00> : vector<1xf32>
      %25 = vector.multi_reduction <add>, %24, %cst_11 [1, 2] : vector<1x32x16xf32> to vector<1xf32>
      %26 = vector.shape_cast %25 : vector<1xf32> to vector<1x1x1xf32>
      %27 = vector.extract %26[0, 0, 0] : f32 from vector<1x1x1xf32>
      %28 = vector.broadcast %27 : f32 to vector<1x8x128xf32>
      %c0_12 = arith.constant 0 : index
      %c0_13 = arith.constant 0 : index
      %c0_14 = arith.constant 0 : index
      %29 = vector.load %arg4[%c0_12, %c0_13, %c0_14] : memref<1x8x128xf32, #tpu.memory_space<vmem>>, vector<1x8x128xf32>
      tpu.vector_store %arg4[%c0_12, %c0_13, %c0_14], %28 {strides = array<i32>} : memref<1x8x128xf32, #tpu.memory_space<vmem>>, vector<1x8x128xf32>,
    } else {
    }
    return
  }
  func.func @transform_0(%arg0: i32, %arg1: i32) -> (i32, i32) {
    %c2_i32 = arith.constant 2 : i32
    %0 = arith.muli %arg0, %c2_i32 : i32
    %1 = arith.addi %0, %arg1 : i32
    %c3_i32 = arith.constant 3 : i32
    %2 = arith.minsi %1, %c3_i32 : i32
    %c0_i32 = arith.constant 0 : i32
    %c0_i32_0 = arith.constant 0 : i32
    return %2, %c0_i32 : i32, i32
  }
  func.func @transform_1(%arg0: i32, %arg1: i32) -> (i32, i32) {
    %c2_i32 = arith.constant 2 : i32
    %0 = arith.muli %arg0, %c2_i32 : i32
    %1 = arith.addi %0, %arg1 : i32
    %c3_i32 = arith.constant 3 : i32
    %2 = arith.minsi %1, %c3_i32 : i32
    %c0_i32 = arith.constant 0 : i32
    %c0_i32_0 = arith.constant 0 : i32
    return %2, %c0_i32 : i32, i32
  }
  func.func @transform_2(%arg0: i32, %arg1: i32) -> (i32, i32, i32) {
    %c0_i32 = arith.constant 0 : i32
    %c0_i32_0 = arith.constant 0 : i32
    %c0_i32_1 = arith.constant 0 : i32
    return %arg0, %c0_i32, %c0_i32_0 : i32, i32, i32
  }
}

</mosaic_0001>

<bundles_post_ra>
// kernel: tpu_custom_call.1
= control target key start
LH: loop header
LB: loop body
LE: loop exit
PB: predicated region body
PF: predicated region fallthrough
CT: control target
= control target key end

     0   :  { %7 = vsyncpa [#allocation4], 0  ;;  %s812_s0 = inlined_call_operand.vmem [shape: f32[120,16], index: 0, kind: input, shape index: {}]   ;;  %s813_s1 = inlined_call_operand.vmem [shape: f32[120,18], index: 1, kind: input, shape index: {}]   ;;  %s814_s2 = inlined_call_operand.hbm [shape: f32[2,8,128], index: 2, kind: output, shape index: {}]  }
   0x1   :  { %9 = vsyncpa [#allocation4 + $0x1], 0  ;;  %s662_s9 = smov 0   ;;  %s664_s10 = smov 0  }
   0x2   :  { %s666_s11 = smov 0   ;;  %s668_s12 = smov 0  }
   0x3   :  { %s670_s13 = smov 0   ;;  %s672_s14 = smov 0  }
   0x4   :  { %s674_s15 = smov 0   ;;  %s676_s16 = smov 0  }
   0x5 LB: > { %s451_s17 = sadd.s32 4294967295, %s643_s16   ;;  %s452_s18 = sadd.s32 4294967294, %s643_s16   ;;  %s643_s16 = sphi %s676_s16, %s15_s16   ;;  %s639_s15 = sphi %s674_s15, %s823_s15   ;;  %s635_s14 = sphi %s672_s14, %s822_s14   ;;  %s631_s13 = sphi %s670_s13, %s821_s13   ;;  %s627_s12 = sphi %s668_s12, %s820_s12   ;;  %s623_s11 = sphi %s666_s11, %s819_s11   ;;  %s619_s10 = sphi %s664_s10, %s818_s10   ;;  %s615_s9 = sphi %s662_s9, %s817_s9  }
   0x6   : > { %s24_s19 = sadd.s32 1, %s635_s14  ;;  %s27_s20 = sadd.s32 1, %s639_s15 }
   0x7   : > { %p25_p0 = scmp.ge.s32.totalorder %s24_s19, 2  ;;  %p112_p1 = scmp.ne.s32.totalorder %s623_s11, %s619_s10 }
   0x8   : > { %p113_p2 = scmp.eq.s32.totalorder %s451_s17, 3  ;;  %p118_p4 = scmp.ne.s32.totalorder %s619_s10, %s615_s9 }
   0x9   : > { %s825_s19 = smov (%p25_p0, %s24_s19), 0  ;;  %s827_s20 = smov (!%p25_p0, %s27_s20), %s639_s15 }
   0xa   : > { %p711_p3 = por %p113_p2, %p112_p1  ;;  %p29_p5 = scmp.ge.s32.totalorder %s827_s20, 2 }
   0xb   : > { %p119_p6 = scmp.eq.s32.totalorder %s452_s18, 3  ;;  %p459_p7 = scmp.ge.s32.totalorder %s643_s16, 1 }
   0xc   : > { %p187_p8 = scmp.lt.s32.totalorder %s643_s16, 5  ;;  %s829_s20 = smov (%p29_p5, %s827_s20), 0 }
   0xd   : > { %p721_p9 = por %p119_p6, %p118_p4  ;;  %s99_s23 = ssub.s32 %s639_s15, %s829_s20 }
   0xe   : > { %p188_p10 = pnand %p459_p7, %p187_p8  ;;  %s102_s24 = sadd.s32 1, %s623_s11 }
   0xf   : > { %p100_p11 = scmp.eq.s32.totalorder %s99_s23, 0  ;;  %s227_s26 = sand.u32 (!%p188_p10), 1, %s619_s10  }
  0x10   : > { %191 = sbr.rel (%p188_p10) target bundleno = 288 (0x120), region = 28  ;;  %s461_s27 = sshll.u32 (!%p188_p10), %s631_s13, 1 }
  0x11   : > { %s729_s25 = scalar_select %p100_p11, %s623_s11, %s102_s24  }
  0x12   : > { %s735_s28 = sshll.u32 (!%p188_p10), %s227_s26, 3  ;;  %s231_s29 = sadd.s32 (!%p188_p10), %s627_s12, %s461_s27 }
  0x13   : > { %p232_p12 = scmp.lt.s32.totalorder (!%p188_p10), %s231_s29, 3  ;;  %s229_s23 = scalar_lea.vmem (!%p188_p10), [#allocation3], %s735_s28 }
  0x14   : > { %p467_p0 = scmp.ne.s32.totalorder (!%p188_p10), %s627_s12, 0 }
  0x17   : > { %s233_s30 = scalar_select %p232_p12, %s231_s29, 3 }
  0x18   : > { %277 = sbr.rel (%p467_p0) target bundleno = 31 (0x1f), region = 32  ;;  %vm278_vm0 = vcmask (!%p467_p0), 130048   ;;  %v645_v0 = vmov (!%p467_p0), 0.0  }
  0x19   : > { %s462_s3 = sshll.u32 %s233_s30, 2  ;;  %279 = vst.msk [vmem:[#allocation2] sm:$0xff] (!%p467_p0), %vm278_vm0, %v645_v0  ;;  %280 = vst.msk [vmem:[#allocation2 + $0x8] sm:$0xff] (!%p467_p0), %vm278_vm0, %v645_v0 }
  0x1a   : > { %p239_p13 = scmp.lt.s32.totalorder %s462_s3, 14  ;;  %281 = vst.msk [vmem:[#allocation2 + $0x10] sm:$0xff] (!%p467_p0), %vm278_vm0, %v645_v0  ;;  %282 = vst.msk [vmem:[#allocation2 + $0x18] sm:$0xff] (!%p467_p0), %vm278_vm0, %v645_v0 }
  0x1c   : > { %s831_s3 = smov (!%p239_p13, %s462_s3), 14 }
  0x1d   : > { %s463_s4 = sshll.u32 %s831_s3, 3 }
  0x1e   : > { %s242_s7 = scalar_lea.vmem %s812_s0, %s463_s4  ;;  %s264_s18 = scalar_lea.vmem %s813_s1, %s463_s4 }
  0x1f PF: > { %v283_v1 = vld [vmem:[%s242_s7] sm:$0xff]  ;;  %v297_v3 = vlaneseq  ;;  %s469_s24 = sshll.u32 %s231_s29, 5  ;;  %v284_v5 = vld [vmem:[%s242_s7 + $0x8] sm:$0xff]  ;;  %v285_v8 = vld [vmem:[%s242_s7 + $0x10] sm:$0xff]  ;;  %vm324_vm2 = vcmask 130048   ;;  %p470_p1 = scmp.ne.s32.totalorder %s627_s12, 1 }
  0x20   : > { %v287_v2 = vld [vmem:[%s264_s18] sm:$0xff]  ;;  %v303_v4 = vstv %s469_s24  ;;  %v288_v7 = vld [vmem:[%s264_s18 + $0x8] sm:$0xff]  ;;  %v289_v9 = vld [vmem:[%s264_s18 + $0x10] sm:$0xff] }
  0x21   : > { %v298_v6 = vshrl.u32 %v297_v3, 7  ;;  %v291_v10 = vmul.f32 %v287_v2, %v283_v1  ;;  %v286_v11 = vld [vmem:[%s242_s7 + $0x18] sm:$0xff]  ;;  %v312_v16 = vld [vmem:[#allocation2] sm:$0xff]  ;;  %v292_v17 = vmul.f32 %v288_v7, %v284_v5  ;;  %v293_v18 = vmul.f32 %v289_v9, %v285_v8  ;;  %v313_v24 = vld [vmem:[#allocation2 + $0x8] sm:$0xff] }
  0x22   : > { %v290_v12 = vld [vmem:[%s264_s18 + $0x18] sm:$0xff]  ;;  %v314_v25 = vld [vmem:[#allocation2 + $0x10] sm:$0xff] }
  0x23   : > { %v304_v13 = vadd.s32 %v303_v4, %v298_v6  ;;  %v299_v14 = vadd.s32 8, %v298_v6  ;;  %v300_v15 = vadd.s32 16, %v298_v6  ;;  %v301_v19 = vadd.s32 24, %v298_v6  ;;  %v315_v28 = vld [vmem:[#allocation2 + $0x18] sm:$0xff] }
  0x24   : > { %v294_v22 = vmul.f32 %v290_v12, %v286_v11 }
  0x25   : > { %vm308_vm1 = vcmp.lt.s32.totalorder %v304_v13, 120  ;;  %v305_v20 = vadd.s32 %v303_v4, %v299_v14  ;;  %v306_v21 = vadd.s32 %v303_v4, %v300_v15  ;;  %v307_v26 = vadd.s32 %v303_v4, %v301_v19 }
  0x26   : > { %v316_v23 = vsel %vm308_vm1, %v291_v10, 0.0  ;;  %332 = sbr.rel (%p470_p1) target bundleno = 264 (0x108), region = 36 }
  0x27   : > { %v320_v27 = vadd.f32 %v316_v23, %v312_v16  ;;  %vm309_vm3 = vcmp.lt.s32.totalorder %v305_v20, 120  ;;  %vm310_vm4 = vcmp.lt.s32.totalorder %v306_v21, 120  ;;  %vm311_vm5 = vcmp.lt.s32.totalorder %v307_v26, 120 }
  0x28   : > { %v317_v29 = vsel %vm309_vm3, %v292_v17, 0.0  ;;  %v318_v30 = vsel %vm310_vm4, %v293_v18, 0.0  ;;  %v319_v33 = vsel %vm311_vm5, %v294_v22, 0.0 }
  0x29   : > { %325 = vst.msk [vmem:[#allocation2] sm:$0xff] %vm324_vm2, %v320_v27  ;;  %v321_v31 = vadd.f32 %v317_v29, %v313_v24  ;;  %v322_v32 = vadd.f32 %v318_v30, %v314_v25  ;;  %v323_v34 = vadd.f32 %v319_v33, %v315_v28 }
  0x2b   : > { %326 = vst.msk [vmem:[#allocation2 + $0x8] sm:$0xff] %vm324_vm2, %v321_v31  ;;  %327 = vst.msk [vmem:[#allocation2 + $0x10] sm:$0xff] %vm324_vm2, %v322_v32 }
  0x2c   : > { %328 = vst.msk [vmem:[#allocation2 + $0x18] sm:$0xff] %vm324_vm2, %v323_v34 }
  0x30   : > { %v333_v35 = vld [vmem:[#allocation2] sm:$0xff] }
  0x31   : > { %v337_v39 = vsel %vm324_vm2, %v333_v35, 0.0 }
  0x32   : > { %v334_v36 = vld [vmem:[#allocation2 + $0x8] sm:$0xff]  ;;  %v335_v37 = vld [vmem:[#allocation2 + $0x10] sm:$0xff] }
  0x33   : > { %v336_v38 = vld [vmem:[#allocation2 + $0x18] sm:$0xff]  ;;  %v338_v40 = vsel %vm324_vm2, %v334_v36, 0.0  ;;  %v340_v41 = vsel %vm324_vm2, %v335_v37, 0.0 }
  0x34   : > { %v339_v42 = vadd.f32 %v338_v40, %v337_v39  ;;  %v342_v43 = vsel %vm324_vm2, %v336_v38, 0.0 }
  0x36   : > { %v341_v44 = vadd.f32 %v340_v41, %v339_v42 }
  0x38   : > { %v343_v45 = vadd.f32 %v342_v43, %v341_v44 }
  0x3a   : > { %344 = vadd.xlane.f32.xlu0 %v343_v45 }
  0xc7   : > { %v345_v46 = vpop.xlane.xlu0 %344 }
  0xc8   : > { %v346_v47 = vrot.slane %v345_v46, 4 }
  0xca   : > { %v347_v48 = vadd.f32 %v346_v47, %v345_v46 }
  0xcc   : > { %v348_v49 = vrot.slane %v347_v48, 2 }
  0xce   : > { %v349_v50 = vadd.f32 %v348_v49, %v347_v48 }
  0xd0   : > { %v350_v51 = vrot.slane %v349_v50, 1 }
  0xd2   : > { %v351_v52 = vadd.f32 %v350_v51, %v349_v50 }
  0xd4   : > { %475 = vpush %v351_v52 }
 0x105   : > { %s476_s12 = spop %475 }
 0x106   : > { %v353_v53 = vstv %s476_s12 }
 0x107   : > { %354 = vst [vmem:[%s229_s23] sm:$0xff] %v353_v53 }
 0x108 PF: > { %s472_s27 = sshll.u32 %s631_s13, 7  ;;  %s369_s4 = sshll.u32 %s229_s23, 4  ;;  %s370_s4 = int_to_ptr.vmem [resolvable:$true] %s369_s4 }
 0x109   : > { %s761_s3 = scalar_lea.hbm %s814_s2, %s472_s27  ;;  %s356_s5 = scalar_lea.sflag [#allocation4], %s227_s26 }
 0x10a   : > { %s549_s6 = scalar_lea.vmem %s370_s4, 128  ;;  %s646_s7 = smov [#allocation3]  }
 0x10b   : > { %p550_p2 = scmp.ne.s32.totalorder %s370_s4, %s549_s6  ;;  %s553_s8 = sshll.u32 %s646_s7, 4  ;;  %s554_s8 = int_to_ptr.vmem [resolvable:$false] %s553_s8 }
 0x10c   : > { %s555_s17 = scalar_lea.vmem %s554_s8, 256  ;;  %p556_p6 = scmp.lt.s32.totalorder %s370_s4, %s554_s8 }
 0x10d   : > { %p551_p4 = pnand %p550_p2, %p711_p3  ;;  %p557_p7 = scmp.lt.s32.totalorder %s555_s17, %s549_s6 }
 0x10f   : > { %p552_p5 = pneg %p551_p4  ;;  %p558_p8 = por %p557_p7, %p556_p6 }
 0x111   : > { %p559_p10 = pnand %p558_p8, %p552_p5 }
 0x113   : > { %562 = shalt.err (!%p559_p10)
}
 0x114   : > { %s563_s13 = scalar_lea.hbm %s761_s3, 128  ;;  %s567_s18 = scalar_lea.hbm %s814_s2, 256 }
 0x115   : > { %p564_p11 = scmp.ne.s32.totalorder %s761_s3, %s563_s13  ;;  %p568_p0 = scmp.lt.u32.totalorder %s761_s3, %s814_s2 }
 0x116   : > { %p569_p1 = scmp.lt.u32.totalorder %s567_s18, %s563_s13  ;;  %p571_p4 = scmp.lt.u32.totalorder %s563_s13, %s761_s3 }
 0x117   : > { %p565_p12 = pnand %p564_p11, %p711_p3 }
 0x118   : > { %p570_p2 = por %p569_p1, %p568_p0 }
 0x119   : > { %p566_p13 = pneg %p565_p12 }
 0x11a   : > { %p572_p5 = por %p571_p4, %p570_p2 }
 0x11c   : > { %p573_p6 = pnand %p572_p5, %p566_p13 }
 0x11e   : > { %576 = shalt.err (!%p573_p6)
}
 0x11f   : > { %477 = dma.vmem_to_hbm [thread:$0]  (%p711_p3), %s370_s4, 128, %s761_s3, %s356_s5  }
 0x120 PF: > { %p483_p7 = scmp.ge.s32.totalorder %s643_s16, 2  ;;  %s381_s12 = sand.u32 1, %s615_s9  }
 0x121   : > { %s382_s27 = scalar_lea.sflag [#allocation4], %s381_s12 }
 0x122   : > { %p480_p8 = pnand %p483_p7, %p721_p9 }
 0x124   : > { %610 = dma.done.wait (!%p480_p8), %s382_s27, 128  }
 0x125   : > { %612 = vsyncadd (!%p480_p8), %s382_s27, 4294967168  ;;  %s15_s16 = sadd.s32 1, %s643_s16   ;;  %s817_s9 = smov %s619_s10 }
 0x126   : > { %p12_p10 = scmp.ge.s32.totalorder %s15_s16, 6   ;;  %s818_s10 = smov %s623_s11 }
 0x127   : > { %s819_s11 = smov %s729_s25  ;;  %s820_s12 = smov %s635_s14 }
 0x128   : > { %s821_s13 = smov %s639_s15  ;;  %s822_s14 = smov %s825_s19 }
 0x129   : > { %s823_s15 = smov %s829_s20  ;;  %14 = sbr.rel (!%p12_p10) target bundleno = 5 (0x5), region = 74 }
 0x130   :  { %387 = vsyncpa [#allocation4], 1 }
 0x131   :  { %389 = vsyncpa [#allocation4 + $0x1], 1 }

</bundles_post_ra>
